<compile_context>
chip_gen: v7x
topology: tpu7x:2x2x1
jax: 0.10.0
libtpu: 0.0.40
codegen_flags: <defaults>
</compile_context>

<pallas_src>
import jax
import jax.numpy as jnp
import numpy as np
from jax.experimental import pallas as pl
from jax.experimental.pallas import tpu as pltpu


def _build_avg_matrix(L, kernel_size):
    """(L, L) matrix A with mean = A @ x reproducing replicate-padded AvgPool1d."""
    pad = (kernel_size - 1) // 2
    i = np.arange(L)[:, None]
    j = np.arange(L)[None, :]
    A = ((j >= i - pad) & (j <= i + pad)).astype(np.float32)
    # Windows overhanging the front (back) pick up extra copies of x[0] (x[L-1]).
    A[:, 0] += np.maximum(pad - np.arange(L), 0)
    A[:, -1] += np.maximum(np.arange(L) + pad + 1 - L, 0)
    return jnp.asarray(A / float(kernel_size), dtype=jnp.float32)


def _decomp_kernel(a_ref, x_ref, res_ref, mean_ref):
    # a_ref: (L, L) averaging matrix, VMEM-resident across the whole grid.
    # x_ref / res_ref / mean_ref: (TB, L, TC) blocks.
    A = a_ref[...]                                   # (L, L) f32
    TB = x_ref.shape[0]
    for b in range(TB):                              # static unroll, TB is small
        xb = x_ref[b].astype(jnp.float32)            # (L, TC)
        mean = jnp.dot(A, xb, preferred_element_type=jnp.float32)   # MXU
        mean_ref[b] = mean.astype(mean_ref.dtype)
        res_ref[b] = (xb - mean).astype(res_ref.dtype)


def series_decomp(x, kernel_size):
    """x: (B, L, C) float array. Returns (res, moving_mean), both (B, L, C)."""
    B, L, C = x.shape
    if kernel_size % 2 != 1:
        raise ValueError("series_decomp requires an odd kernel_size "
                         "(res = x - moving_mean needs L_out == L).")
    pad = (kernel_size - 1) // 2
    if pad == 0:
        # kernel_size == 1: moving average is the identity.
        return jnp.zeros_like(x), x

    A = _build_avg_matrix(L, kernel_size)
    itemsize = jnp.dtype(x.dtype).itemsize

    # Channel tiling: full C when it fits (lane dim == full array dim is always legal),
    # otherwise 512-lane tiles (multiple of 128 -> lane-dense, bounds VMEM on v7x).
    TC = C if C <= 512 else 512
    n_c = pl.cdiv(C, TC)

    # Batch folding: amortize per-grid-step overhead.  Bound the per-array block at
    # ~2 MiB and cap the static unroll.
    per_batch_bytes = max(L * TC * itemsize, 1)
    TB = max(1, min(B, 8, (2 * 1024 * 1024) // per_batch_bytes))
    n_b = pl.cdiv(B, TB)
    # v7x has 2 TensorCores: avoid a single-step grid when there is batch to split.
    if n_b * n_c == 1 and B >= 2:
        TB = pl.cdiv(B, 2)
        n_b = pl.cdiv(B, TB)

    # Scheduler hint: mem-bound custom call.
    cost = pl.CostEstimate(
        flops=2 * B * L * L * C + B * L * C,
        transcendentals=0,
        bytes_accessed=3 * B * L * C * itemsize + L * L * 4,
    )

    # VMEM budget: A (double-buffered) + 2x pipeline buffers for 3 (TB, L, TC) arrays
    # + f32 in-kernel temporaries + headroom; clamped to a range safe on every
    # generation (v7x physical VMEM is only 64 MiB).
    block_bytes = TB * L * TC * itemsize
    est = 2 * (L * L * 4) + 6 * block_bytes + 4 * TB * L * TC * 4 + (4 << 20)
    vmem_limit = int(min(max(est, 32 * 1024 * 1024), 60 * 1024 * 1024))

    res, mean = pl.pallas_call(
        _decomp_kernel,
        out_shape=(
            jax.ShapeDtypeStruct((B, L, C), x.dtype),  # res
            jax.ShapeDtypeStruct((B, L, C), x.dtype),  # moving_mean
        ),
        grid_spec=pltpu.PrefetchScalarGridSpec(
            num_scalar_prefetch=0,
            grid=(n_b, n_c),
            in_specs=[
                pl.BlockSpec((L, L), lambda b, c: (0, 0)),        # A, resident
                pl.BlockSpec((TB, L, TC), lambda b, c: (b, 0, c)),
            ],
            out_specs=[
                pl.BlockSpec((TB, L, TC), lambda b, c: (b, 0, c)),
                pl.BlockSpec((TB, L, TC), lambda b, c: (b, 0, c)),
            ],
        ),
        compiler_params=pltpu.CompilerParams(
            dimension_semantics=("parallel", "parallel"),
            vmem_limit_bytes=vmem_limit,
        ),
        cost_estimate=cost,
    )(A, x)
    return res, mean


def _reference(x, kernel_size):
    # Pure-JAX reference mirroring the PyTorch forward exactly.
    pad = (kernel_size - 1) // 2
    front = jnp.repeat(x[:, 0:1, :], pad, axis=1)
    end = jnp.repeat(x[:, -1:, :], pad, axis=1)
    xp = jnp.concatenate([front, x, end], axis=1)
    L = x.shape[1]
    windows = jnp.stack([xp[:, i:i + L, :] for i in range(kernel_size)], axis=0)
    mean = jnp.mean(windows, axis=0)
    return x - mean, mean


if __name__ == "__main__":
    key = jax.random.PRNGKey(0)
    configs = [
        # (B, L, C, kernel_size) -- kernel_size=25 is the canonical LTSF-Linear value.
        (2, 48, 16, 25),
        (2, 32, 7, 5),
        (3, 40, 9, 25),   # partial last batch block (B % TB != 0)
        (2, 8, 7, 25),    # pad >= L: both overhang terms active on every row
        (2, 16, 5, 1),    # kernel_size == 1 identity fast path
    ]
    for i, (B, L, C, ks) in enumerate(configs):
        sub, key = jax.random.split(key)
        x = jax.random.normal(sub, (B, L, C), dtype=jnp.float32)

        res, mean = series_decomp(x, ks)
        res = jax.block_until_ready(res)
        mean = jax.block_until_ready(mean)

        res_ref, mean_ref = _reference(x, ks)
        np.testing.assert_allclose(np.asarray(mean), np.asarray(mean_ref),
                                   atol=1e-5, rtol=1e-5,
                                   err_msg=f"moving_mean mismatch (cfg {i})")
        np.testing.assert_allclose(np.asarray(res), np.asarray(res_ref),
                                   atol=1e-5, rtol=1e-5,
                                   err_msg=f"res mismatch (cfg {i})")

    print("KERNEL_OK")
</pallas_src>

<mosaic_0001>
module attributes {stable_mosaic.version = 11 : i64} {
  func.func @_decomp_kernel(%arg0: i32, %arg1: i32, %arg2: memref<48x48xf32, #tpu.memory_space<vmem>>, %arg3: memref<1x48x16xf32, #tpu.memory_space<vmem>>, %arg4: memref<1x48x16xf32, #tpu.memory_space<vmem>>, %arg5: memref<1x48x16xf32, #tpu.memory_space<vmem>>) attributes {dimension_semantics = [#tpu.dimension_semantics<parallel>, #tpu.dimension_semantics<parallel>], iteration_bounds = array<i64: 2, 1>, scalar_prefetch = 0 : i64, scratch_operands = 0 : i64, tpu.core_type = #tpu.core_type<tc>, window_params = [{pipeline_mode = #tpu.pipeline_mode<synchronous>, transform_indices = @transform_0, window_bounds = array<i64: 48, 48>}, {transform_indices = @transform_1, window_bounds = array<i64: 1, 48, 16>}, {transform_indices = @transform_2, window_bounds = array<i64: 1, 48, 16>}, {transform_indices = @transform_3, window_bounds = array<i64: 1, 48, 16>}]} {
    %c0 = arith.constant 0 : index
    %c0_0 = arith.constant 0 : index
    %0 = vector.load %arg2[%c0, %c0_0] : memref<48x48xf32, #tpu.memory_space<vmem>>, vector<48x48xf32>
    %c0_1 = arith.constant 0 : index
    %c0_2 = arith.constant 0 : index
    %c0_3 = arith.constant 0 : index
    %1 = vector.load %arg3[%c0_1, %c0_2, %c0_3] : memref<1x48x16xf32, #tpu.memory_space<vmem>>, vector<1x48x16xf32>
    %2 = vector.shape_cast %1 : vector<1x48x16xf32> to vector<48x16xf32>
    %cst = arith.constant dense<0.000000e+00> : vector<48x16xf32>
    %3 = tpu.matmul %0, %2, %cst {dimension_numbers = #tpu.dot_dimension_numbers<[1], [0], [0], [1], [0, 0, 1, 1], [], []>} : vector<48x48xf32>, vector<48x16xf32>, vector<48x16xf32> -> vector<48x16xf32>
    %c0_4 = arith.constant 0 : index
    %c0_5 = arith.constant 0 : index
    %c0_6 = arith.constant 0 : index
    %4 = vector.load %arg5[%c0_4, %c0_5, %c0_6] : memref<1x48x16xf32, #tpu.memory_space<vmem>>, vector<1x48x16xf32>
    %5 = vector.shape_cast %4 : vector<1x48x16xf32> to vector<48x16xf32>
    %6 = vector.shape_cast %3 : vector<48x16xf32> to vector<1x48x16xf32>
    tpu.vector_store %arg5[%c0_4, %c0_5, %c0_6], %6 {strides = array<i32>} : memref<1x48x16xf32, #tpu.memory_space<vmem>>, vector<1x48x16xf32>,
    %7 = arith.subf %2, %3 : vector<48x16xf32>
    %c0_7 = arith.constant 0 : index
    %c0_8 = arith.constant 0 : index
    %c0_9 = arith.constant 0 : index
    %8 = vector.load %arg4[%c0_7, %c0_8, %c0_9] : memref<1x48x16xf32, #tpu.memory_space<vmem>>, vector<1x48x16xf32>
    %9 = vector.shape_cast %8 : vector<1x48x16xf32> to vector<48x16xf32>
    %10 = vector.shape_cast %7 : vector<48x16xf32> to vector<1x48x16xf32>
    tpu.vector_store %arg4[%c0_7, %c0_8, %c0_9], %10 {strides = array<i32>} : memref<1x48x16xf32, #tpu.memory_space<vmem>>, vector<1x48x16xf32>,
    return
  }
  func.func @transform_0(%arg0: i32, %arg1: i32) -> (i32, i32) {
    %c0_i32 = arith.constant 0 : i32
    %c0_i32_0 = arith.constant 0 : i32
    %c0_i32_1 = arith.constant 0 : i32
    return %c0_i32, %c0_i32_0 : i32, i32
  }
  func.func @transform_1(%arg0: i32, %arg1: i32) -> (i32, i32, i32) {
    %c0_i32 = arith.constant 0 : i32
    %c0_i32_0 = arith.constant 0 : i32
    return %arg0, %c0_i32, %arg1 : i32, i32, i32
  }
  func.func @transform_2(%arg0: i32, %arg1: i32) -> (i32, i32, i32) {
    %c0_i32 = arith.constant 0 : i32
    %c0_i32_0 = arith.constant 0 : i32
    return %arg0, %c0_i32, %arg1 : i32, i32, i32
  }
  func.func @transform_3(%arg0: i32, %arg1: i32) -> (i32, i32, i32) {
    %c0_i32 = arith.constant 0 : i32
    %c0_i32_0 = arith.constant 0 : i32
    return %arg0, %c0_i32, %arg1 : i32, i32, i32
  }
}

</mosaic_0001>

<bundles_post_ra>
// kernel: tpu_custom_call.1
= control target key start
LH: loop header
LB: loop body
LE: loop exit
PB: predicated region body
PF: predicated region fallthrough
CT: control target
= control target key end

     0   :  { %s634_s12 = smov 0   ;;  %s636_s13 = smov 0   ;;  %s711_s0 = inlined_call_operand.vmem [shape: f32[48,48], index: 0, kind: input, shape index: {}]   ;;  %s712_s1 = inlined_call_operand.vmem [shape: f32[2,48,16], index: 1, kind: input, shape index: {}]   ;;  %s713_s2 = inlined_call_operand.vmem [shape: f32[2,48,16], index: 2, kind: output, shape index: {0}]   ;;  %s714_s3 = inlined_call_operand.vmem [shape: f32[2,48,16], index: 3, kind: output, shape index: {1}]  }
   0x1   :  { %s638_s14 = smov 0  }
   0x2 LB: > { %s26_s15 = sadd.s32 1, %s608_s13  ;;  %p502_p0 = scmp.ge.s32.totalorder %s612_s14, 1  ;;  %s612_s14 = sphi %s638_s14, %s14_s14   ;;  %s608_s13 = sphi %s636_s13, %s716_s13   ;;  %s604_s12 = sphi %s634_s12, %s715_s12  }
   0x3   : > { %p28_p1 = scmp.ge.s32.totalorder %s26_s15, 2  ;;  %p161_p2 = scmp.lt.s32.totalorder %s612_s14, 3 }
   0x5   : > { %s718_s15 = smov (%p28_p1, %s26_s15), 0  ;;  %p162_p3 = pnand %p502_p0, %p161_p2 }
   0x6   : > { %p199_p4 = scmp.lt.s32.totalorder (!%p162_p3), %s604_s12, 1  ;;  %v225_v0 = vld [vmem:[%s711_s0 + $0x10] sm:$0xff] (!%p162_p3)  ;;  %vm235_vm0 = vcmask (!%p162_p3), 392192   ;;  %v223_v1 = vld [vmem:[%s711_s0] sm:$0xff] (!%p162_p3)  ;;  %v226_v11 = vld [vmem:[%s711_s0 + $0x18] sm:$0xff] (!%p162_p3)  ;;  %vm349_vm1 = vcmask (!%p162_p3), 130048  }
   0x7   : > { %165 = sbr.rel (%p162_p3) target bundleno = 253 (0xfd), region = 28  ;;  %541 = vmatprep.mubr.msk.f32.mxu1 (!%p162_p3), %vm235_vm0, %v225_v0  ;;  %538 = vmatprep.mubr.msk.f32.mxu0 (!%p162_p3), %vm235_vm0, %v223_v1  ;;  %v224_v12 = vld [vmem:[%s711_s0 + $0x8] sm:$0xff] (!%p162_p3)  ;;  %v227_v13 = vld [vmem:[%s711_s0 + $0x20] sm:$0xff] (!%p162_p3) }
   0x8   : > { %v228_v14 = vld [vmem:[%s711_s0 + $0x28] sm:$0xff] (!%p162_p3) }
   0xe   : > { %s720_s12 = smov (!%p199_p4, %s604_s12), 1 }
   0xf   : > { %s660_s20 = smul.u32 48, %s720_s12 }
  0x11   : > { %s206_s23 = scalar_lea.vmem %s712_s1, %s660_s20  ;;  %s222_s7 = scalar_lea.vmem %s714_s3, %s660_s20 }
  0x12   : > { %v229_v2 = vld [vmem:[%s206_s23] sm:$0xff]  ;;  %v230_v3 = vld [vmem:[%s206_s23 + $0x8] sm:$0xff]  ;;  %v231_v4 = vld [vmem:[%s206_s23 + $0x10] sm:$0xff]  ;;  %s214_s10 = scalar_lea.vmem %s713_s2, %s660_s20 }
  0x13   : > { %v547_v5 = vpack.c.bf16 %v230_v3, %v229_v2  ;;  %v232_v6 = vld [vmem:[%s206_s23 + $0x18] sm:$0xff]  ;;  %v233_v8 = vld [vmem:[%s206_s23 + $0x20] sm:$0xff]  ;;  %v234_v9 = vld [vmem:[%s206_s23 + $0x28] sm:$0xff] }
  0x14   : > { %v551_v7 = vpack.c.bf16 %v232_v6, %v231_v4  ;;  %v555_v10 = vpack.c.bf16 %v234_v9, %v233_v8 }
  0x15   : > { %559 = vmatprep.subr.bf16.mxu1 %v547_v5  ;;  %548 = vmatprep.subr.bf16.mxu0 %v547_v5 }
  0x16   : > { %562 = vmatpush3.bf16.msra.mxu1 %v547_v5  ;;  %550 = vmatpush3.bf16.msra.mxu0 %v547_v5 }
  0x17   : > { %560 = vmatprep.subr.bf16.mxu1 %v551_v7  ;;  %552 = vmatprep.subr.bf16.mxu0 %v551_v7 }
  0x1a   : > { %563 = vmatpush3.bf16.msra.mxu1 %v551_v7  ;;  %554 = vmatpush3.bf16.msra.mxu0 %v551_v7 }
  0x1b   : > { %561 = vmatprep.subr.bf16.mxu1 %v555_v10  ;;  %556 = vmatprep.subr.bf16.mxu0 %v555_v10 }
  0x1e   : > { %564 = vmatpush3.bf16.msra.mxu1 %v555_v10  ;;  %558 = vmatpush3.bf16.msra.mxu0 %v555_v10 }
  0x21   : > { %542 = vmatmul.mubr.msk.f32.vlgmr.msra.gmra.mrb[0].mxu1 %vm235_vm0, %v226_v11  ;;  %539 = vmatmul.mubr.msk.f32.vlgmr.msra.gmra.mrb[0].mxu0 %vm235_vm0, %v224_v12 }
  0x22   : > { %544 = vmatprep.mubr.msk.f32.mxu1 %vm235_vm0, %v227_v13 }
  0x25   : > { %545 = vmatmul.mubr.msk.f32.gmra.mrb[2].mxu1 %vm235_vm0, %v228_v14 }
  0xf4   : > { %v543_v15 = vpop.f32.mrb[0].mxu1  ;;  %v540_v16 = vpop.f32.mrb[0].mxu0 }
  0xf5   : > { %353 = vst.msk [vmem:[%s222_s7 + $0x18] sm:$0xff] %vm349_vm1, %v543_v15  ;;  %v359_v17 = vsub.f32 %v232_v6, %v543_v15  ;;  %v330_v18 = vpop.f32.mrb[1].mxu1  ;;  %351 = vst.msk [vmem:[%s222_s7 + $0x8] sm:$0xff] %vm349_vm1, %v540_v16  ;;  %v357_v19 = vsub.f32 %v230_v3, %v540_v16  ;;  %v320_v20 = vpop.f32.mrb[1].mxu0 }
  0xf6   : > { %352 = vst.msk [vmem:[%s222_s7 + $0x10] sm:$0xff] %vm349_vm1, %v330_v18  ;;  %v358_v21 = vsub.f32 %v231_v4, %v330_v18  ;;  %350 = vst.msk [vmem:[%s222_s7] sm:$0xff] %vm349_vm1, %v320_v20  ;;  %v356_v22 = vsub.f32 %v229_v2, %v320_v20 }
  0xf7   : > { %365 = vst.msk [vmem:[%s214_s10 + $0x18] sm:$0xff] %vm349_vm1, %v359_v17  ;;  %363 = vst.msk [vmem:[%s214_s10 + $0x8] sm:$0xff] %vm349_vm1, %v357_v19 }
  0xf8   : > { %364 = vst.msk [vmem:[%s214_s10 + $0x10] sm:$0xff] %vm349_vm1, %v358_v21  ;;  %362 = vst.msk [vmem:[%s214_s10] sm:$0xff] %vm349_vm1, %v356_v22  ;;  %v546_v23 = vpop.f32.mrb[2].mxu1 }
  0xf9   : > { %355 = vst.msk [vmem:[%s222_s7 + $0x28] sm:$0xff] %vm349_vm1, %v546_v23  ;;  %v361_v24 = vsub.f32 %v234_v9, %v546_v23  ;;  %v340_v25 = vpop.f32.mrb[3].mxu1 }
  0xfa   : > { %354 = vst.msk [vmem:[%s222_s7 + $0x20] sm:$0xff] %vm349_vm1, %v340_v25  ;;  %v360_v26 = vsub.f32 %v233_v8, %v340_v25 }
  0xfb   : > { %367 = vst.msk [vmem:[%s214_s10 + $0x28] sm:$0xff] %vm349_vm1, %v361_v24 }
  0xfc   : > { %366 = vst.msk [vmem:[%s214_s10 + $0x20] sm:$0xff] %vm349_vm1, %v360_v26 }
  0xfd PF: > { %s14_s14 = sadd.s32 1, %s612_s14   ;;  %s715_s12 = smov %s608_s13 }
  0xfe   : > { %p11_p5 = scmp.ge.s32.totalorder %s14_s14, 4   ;;  %s716_s13 = smov %s718_s15 }
 0x100   :  { %13 = sbr.rel (!%p11_p5) target bundleno = 2 (0x2), region = 70 }

</bundles_post_ra>
